<compile_context>
chip_gen: v7x
topology: tpu7x:2x2x1
jax: 0.10.0
libtpu: 0.0.40
codegen_flags: <defaults>
</compile_context>

<pallas_src>
import functools
import math

import jax
import jax.numpy as jnp
from jax.experimental import pallas as pl
from jax.experimental.pallas import tpu as pltpu


# ----------------------------- activation table ------------------------------
_ACT_FNS = {
    "swish": lambda z: z * jax.nn.sigmoid(z),   # SiLU, matches torch swish
    "silu": lambda z: z * jax.nn.sigmoid(z),
    "relu": lambda z: jnp.maximum(z, 0.0),
    "tanh": jnp.tanh,
    "sigmoid": jax.nn.sigmoid,
    "identity": lambda z: z,
}

_LANE = 128           # lane width
_SUBLANE_BF16 = 16    # bf16 sublane packing


def _round_up(x, n):
    return ((x + n - 1) // n) * n


# --------------------------------- kernel ------------------------------------
def _mlp_kernel(x_ref, *refs, num_layers, act, out_act, compute_dtype):
    """Fused MLP for one row-tile: (TM, d_in) -> (TM, d_out_padded).

    refs = (w0, b0, w1, b1, ..., w_{L-1}, b_{L-1}, out_ref)
    Weights are `compute_dtype` (MXU inputs); biases / accumulation / activations f32.
    """
    out_ref = refs[-1]
    # In-kernel cast: x streams in as f32 and is narrowed here (no extra XLA pass).
    h = x_ref[...].astype(compute_dtype)                 # (TM, d_in)
    for i in range(num_layers):                          # static unroll over layers
        w = refs[2 * i][...]                             # (d_in_i, d_out_i)
        b = refs[2 * i + 1][...]                         # f32 (1, d_out_i)
        z = jnp.dot(h, w, preferred_element_type=jnp.float32) + b
        if i < num_layers - 1:
            h = act(z).astype(compute_dtype)             # VPU/EUP in f32, narrow for MXU
        else:
            out_ref[...] = out_act(z).astype(out_ref.dtype)


# -------------------------------- wrapper -------------------------------------
def mlp_pallas(x, params, *, act_fn="swish", out_act_fn="identity",
               block_m=1024, compute_dtype=jnp.bfloat16,
               vmem_budget_bytes=40 << 20):
    """Run the fused MLP.

    x:      (..., input_dim) float array (any leading batch dims).
    params: list of (w, b) per Linear, w of shape (fan_in, fan_out), b of shape (fan_out,).
            Hidden linears use `act_fn`, final uses `out_act_fn` (PyTorch-module defaults).
    """
    orig_shape = x.shape
    d_in = orig_shape[-1]
    d_out = params[-1][0].shape[1]
    d_out_p = _round_up(d_out, _LANE)                    # lane-dense output width

    x2d = x.reshape(-1, d_in).astype(jnp.float32)
    m = x2d.shape[0]
    num_layers = len(params)
    compute_itemsize = jnp.dtype(compute_dtype).itemsize

    # ---- weights (compute_dtype MXU operands) / biases (f32); pad final layer lane-dense.
    flat_params = []
    for li, (w, b) in enumerate(params):
        w = jnp.asarray(w, jnp.float32)
        b = jnp.asarray(b, jnp.float32).reshape(1, -1)
        if li == num_layers - 1 and d_out_p != d_out:
            w = jnp.pad(w, ((0, 0), (0, d_out_p - d_out)))
            b = jnp.pad(b, ((0, 0), (0, d_out_p - d_out)))
        flat_params.append(w.astype(compute_dtype))
        flat_params.append(b)

    weight_bytes = sum(int(a.size) * a.dtype.itemsize for a in flat_params)
    # Single-buffer the grid-invariant parameters only when they are big enough to matter.
    single_buffer_weights = weight_bytes > (8 << 20)

    layer_out_dims = [flat_params[2 * i].shape[1] for i in range(num_layers)]

    def vmem_estimate(tm_):
        xb = 2 * tm_ * d_in * 4                          # x tile, double-buffered, f32
        yb = 2 * tm_ * d_out_p * 4                       # out tile, double-buffered, f32
        ab = sum(tm_ * d * (4 + compute_itemsize) for d in layer_out_dims)  # live activations
        wb = weight_bytes * (1 if single_buffer_weights else 2)
        return xb + yb + ab + wb

    # ---- row tile selection: big tiles (amortize ~600-cycle grid-step overhead),
    #      multiple of 16, >= 2 grid steps for v7x's two TensorCores, VMEM-budgeted.
    m16 = _round_up(max(m, 1), _SUBLANE_BF16)
    tm = min(_round_up(block_m, _SUBLANE_BF16), m16)
    if m16 > _SUBLANE_BF16 and pl.cdiv(m16, tm) < 2:
        tm = _round_up(pl.cdiv(m16, 2), _SUBLANE_BF16)   # split so both v7x TCs get work
    while tm > _SUBLANE_BF16 and vmem_estimate(tm) > vmem_budget_bytes:
        tm = _round_up(tm // 2, _SUBLANE_BF16)

    m_pad = pl.cdiv(m, tm) * tm
    if m_pad != m:
        # TODO(synk): mask the ragged tail in-kernel instead of a wrapper-side pad pass.
        x2d = jnp.pad(x2d, ((0, m_pad - m), (0, 0)))

    kernel = functools.partial(
        _mlp_kernel,
        num_layers=num_layers,
        act=_ACT_FNS[act_fn],
        out_act=_ACT_FNS[out_act_fn],
        compute_dtype=compute_dtype,
    )

    # ---- BlockSpecs: x/y stream row tiles; weights/biases are grid-invariant full blocks.
    in_specs = [pl.BlockSpec((tm, d_in), lambda i: (i, 0))]
    for a in flat_params:
        nd = a.ndim
        idx_map = (lambda i, _nd=nd: (0,) * _nd)
        if single_buffer_weights:
            in_specs.append(pl.BlockSpec(a.shape, idx_map, pipeline_mode=pl.Buffered(1)))
        else:
            in_specs.append(pl.BlockSpec(a.shape, idx_map))

    flops = 2 * m_pad * sum(flat_params[2 * i].shape[0] * flat_params[2 * i].shape[1]
                            for i in range(num_layers))
    transcendentals = m_pad * sum(layer_out_dims[:-1])   # one exp per swish element
    bytes_accessed = m_pad * d_in * 4 + m_pad * d_out_p * 4 + weight_bytes
    cost = pl.CostEstimate(flops=int(flops), transcendentals=int(transcendentals),
                           bytes_accessed=int(bytes_accessed))

    vmem_limit = int(min(max(2 * vmem_estimate(tm), 32 << 20), 64 << 20))

    y = pl.pallas_call(
        kernel,
        out_shape=jax.ShapeDtypeStruct((m_pad, d_out_p), jnp.float32),
        grid_spec=pltpu.PrefetchScalarGridSpec(
            num_scalar_prefetch=0,
            grid=(m_pad // tm,),
            in_specs=in_specs,
            out_specs=pl.BlockSpec((tm, d_out_p), lambda i: (i, 0)),
        ),
        compiler_params=pltpu.CompilerParams(
            dimension_semantics=("parallel",),
            vmem_limit_bytes=vmem_limit,
        ),
        cost_estimate=cost,
    )(x2d, *flat_params)

    return y[:m, :d_out].reshape(*orig_shape[:-1], d_out)


# ----------------------- parameter init (torch.nn.Linear) ---------------------
def init_mlp_params(key, input_dim, output_dim, hidden_dims):
    """Mirrors MLP.__init__: Linear(d_i, d_{i+1}) per hidden dim, then Linear(-> output_dim).
    Weights stored as (fan_in, fan_out) so the kernel does x @ w."""
    if isinstance(hidden_dims, int):
        hidden_dims = [hidden_dims]
    dims = [input_dim] + list(hidden_dims)
    shapes = [(dims[i], dims[i + 1]) for i in range(len(dims) - 1)] + [(dims[-1], output_dim)]
    params = []
    for fi, fo in shapes:
        key, kw, kb = jax.random.split(key, 3)
        bound = 1.0 / math.sqrt(fi)
        w = jax.random.uniform(kw, (fi, fo), jnp.float32, -bound, bound)
        b = jax.random.uniform(kb, (fo,), jnp.float32, -bound, bound)
        params.append((w, b))
    return params


# ------------------------- pure-JAX reference check ---------------------------
def _mlp_ref(x2d, params, act_fn="swish", out_act_fn="identity"):
    act, out_act = _ACT_FNS[act_fn], _ACT_FNS[out_act_fn]
    h = x2d
    for i, (w, b) in enumerate(params):
        z = jnp.dot(h.astype(jnp.bfloat16), w.astype(jnp.bfloat16),
                    preferred_element_type=jnp.float32) + b.astype(jnp.float32)
        h = act(z) if i < len(params) - 1 else out_act(z)
    return h


if __name__ == "__main__":
    # MLP(input_dim=32, hidden_dims=[128, 128], output_dim=8) applied to a (2, 128, 32)
    # input (flattened to 256 rows -> two 128-row tiles so both v7x TCs get one).
    input_dim, hidden_dims, output_dim = 32, [128, 128], 8
    batch_shape = (2, 128)

    root = jax.random.PRNGKey(0)
    kx, kp = jax.random.split(root)
    x = jax.random.normal(kx, batch_shape + (input_dim,), jnp.float32)
    params = init_mlp_params(kp, input_dim, output_dim, hidden_dims)

    y = mlp_pallas(x, params)            # swish hidden act, identity output act
    jax.block_until_ready(y)
    assert y.shape == batch_shape + (output_dim,)

    y_ref = _mlp_ref(x.reshape(-1, input_dim), params).reshape(y.shape)
    err = jnp.max(jnp.abs(y - y_ref))
    assert err < 2e-3, f"max abs err {err}"

    print("KERNEL_OK")
</pallas_src>

<mosaic_0001>
module attributes {stable_mosaic.version = 11 : i64} {
  func.func @_mlp_kernel(%arg0: i32, %arg1: memref<128x32xf32, #tpu.memory_space<vmem>>, %arg2: memref<32x128xbf16, #tpu.memory_space<vmem>>, %arg3: memref<1x128xf32, #tpu.memory_space<vmem>>, %arg4: memref<128x128xbf16, #tpu.memory_space<vmem>>, %arg5: memref<1x128xf32, #tpu.memory_space<vmem>>, %arg6: memref<128x128xbf16, #tpu.memory_space<vmem>>, %arg7: memref<1x128xf32, #tpu.memory_space<vmem>>, %arg8: memref<128x128xf32, #tpu.memory_space<vmem>>) attributes {dimension_semantics = [#tpu.dimension_semantics<parallel>], iteration_bounds = array<i64: 2>, scalar_prefetch = 0 : i64, scratch_operands = 0 : i64, tpu.core_type = #tpu.core_type<tc>, window_params = [{transform_indices = @transform_0, window_bounds = array<i64: 128, 32>}, {pipeline_mode = #tpu.pipeline_mode<synchronous>, transform_indices = @transform_1, window_bounds = array<i64: 32, 128>}, {pipeline_mode = #tpu.pipeline_mode<synchronous>, transform_indices = @transform_2, window_bounds = array<i64: 1, 128>}, {pipeline_mode = #tpu.pipeline_mode<synchronous>, transform_indices = @transform_3, window_bounds = array<i64: 128, 128>}, {pipeline_mode = #tpu.pipeline_mode<synchronous>, transform_indices = @transform_4, window_bounds = array<i64: 1, 128>}, {pipeline_mode = #tpu.pipeline_mode<synchronous>, transform_indices = @transform_5, window_bounds = array<i64: 128, 128>}, {pipeline_mode = #tpu.pipeline_mode<synchronous>, transform_indices = @transform_6, window_bounds = array<i64: 1, 128>}, {transform_indices = @transform_7, window_bounds = array<i64: 128, 128>}]} {
    %c0 = arith.constant 0 : index
    %c0_0 = arith.constant 0 : index
    %0 = vector.load %arg1[%c0, %c0_0] : memref<128x32xf32, #tpu.memory_space<vmem>>, vector<128x32xf32>
    %1 = arith.truncf %0 : vector<128x32xf32> to vector<128x32xbf16>
    %c0_1 = arith.constant 0 : index
    %c0_2 = arith.constant 0 : index
    %2 = vector.load %arg2[%c0_1, %c0_2] : memref<32x128xbf16, #tpu.memory_space<vmem>>, vector<32x128xbf16>
    %c0_3 = arith.constant 0 : index
    %c0_4 = arith.constant 0 : index
    %3 = vector.load %arg3[%c0_3, %c0_4] : memref<1x128xf32, #tpu.memory_space<vmem>>, vector<1x128xf32>
    %cst = arith.constant dense<0.000000e+00> : vector<128x128xf32>
    %4 = tpu.matmul %1, %2, %cst {dimension_numbers = #tpu.dot_dimension_numbers<[1], [0], [0], [1], [0, 0, 1, 1], [], []>} : vector<128x32xbf16>, vector<32x128xbf16>, vector<128x128xf32> -> vector<128x128xf32>
    %5 = vector.broadcast %3 : vector<1x128xf32> to vector<128x128xf32>
    %6 = arith.addf %4, %5 : vector<128x128xf32>
    %7 = arith.negf %6 : vector<128x128xf32>
    %8 = math.exp %7 : vector<128x128xf32>
    %cst_5 = arith.constant 1.000000e+00 : f32
    %9 = vector.broadcast %cst_5 : f32 to vector<128x128xf32>
    %10 = arith.addf %9, %8 : vector<128x128xf32>
    %11 = arith.divf %9, %10 : vector<128x128xf32>
    %12 = arith.mulf %6, %11 : vector<128x128xf32>
    %13 = arith.truncf %12 : vector<128x128xf32> to vector<128x128xbf16>
    %c0_6 = arith.constant 0 : index
    %c0_7 = arith.constant 0 : index
    %14 = vector.load %arg4[%c0_6, %c0_7] : memref<128x128xbf16, #tpu.memory_space<vmem>>, vector<128x128xbf16>
    %c0_8 = arith.constant 0 : index
    %c0_9 = arith.constant 0 : index
    %15 = vector.load %arg5[%c0_8, %c0_9] : memref<1x128xf32, #tpu.memory_space<vmem>>, vector<1x128xf32>
    %cst_10 = arith.constant dense<0.000000e+00> : vector<128x128xf32>
    %16 = tpu.matmul %13, %14, %cst_10 {dimension_numbers = #tpu.dot_dimension_numbers<[1], [0], [0], [1], [0, 0, 1, 1], [], []>} : vector<128x128xbf16>, vector<128x128xbf16>, vector<128x128xf32> -> vector<128x128xf32>
    %17 = vector.broadcast %15 : vector<1x128xf32> to vector<128x128xf32>
    %18 = arith.addf %16, %17 : vector<128x128xf32>
    %19 = arith.negf %18 : vector<128x128xf32>
    %20 = math.exp %19 : vector<128x128xf32>
    %cst_11 = arith.constant 1.000000e+00 : f32
    %21 = vector.broadcast %cst_11 : f32 to vector<128x128xf32>
    %22 = arith.addf %21, %20 : vector<128x128xf32>
    %23 = arith.divf %21, %22 : vector<128x128xf32>
    %24 = arith.mulf %18, %23 : vector<128x128xf32>
    %25 = arith.truncf %24 : vector<128x128xf32> to vector<128x128xbf16>
    %c0_12 = arith.constant 0 : index
    %c0_13 = arith.constant 0 : index
    %26 = vector.load %arg6[%c0_12, %c0_13] : memref<128x128xbf16, #tpu.memory_space<vmem>>, vector<128x128xbf16>
    %c0_14 = arith.constant 0 : index
    %c0_15 = arith.constant 0 : index
    %27 = vector.load %arg7[%c0_14, %c0_15] : memref<1x128xf32, #tpu.memory_space<vmem>>, vector<1x128xf32>
    %cst_16 = arith.constant dense<0.000000e+00> : vector<128x128xf32>
    %28 = tpu.matmul %25, %26, %cst_16 {dimension_numbers = #tpu.dot_dimension_numbers<[1], [0], [0], [1], [0, 0, 1, 1], [], []>} : vector<128x128xbf16>, vector<128x128xbf16>, vector<128x128xf32> -> vector<128x128xf32>
    %29 = vector.broadcast %27 : vector<1x128xf32> to vector<128x128xf32>
    %30 = arith.addf %28, %29 : vector<128x128xf32>
    %c0_17 = arith.constant 0 : index
    %c0_18 = arith.constant 0 : index
    %31 = vector.load %arg8[%c0_17, %c0_18] : memref<128x128xf32, #tpu.memory_space<vmem>>, vector<128x128xf32>
    tpu.vector_store %arg8[%c0_17, %c0_18], %30 {strides = array<i32>} : memref<128x128xf32, #tpu.memory_space<vmem>>, vector<128x128xf32>,
    return
  }
  func.func @transform_0(%arg0: i32) -> (i32, i32) {
    %c0_i32 = arith.constant 0 : i32
    %c0_i32_0 = arith.constant 0 : i32
    return %arg0, %c0_i32 : i32, i32
  }
  func.func @transform_1(%arg0: i32) -> (i32, i32) {
    %c0_i32 = arith.constant 0 : i32
    %c0_i32_0 = arith.constant 0 : i32
    %c0_i32_1 = arith.constant 0 : i32
    return %c0_i32, %c0_i32_0 : i32, i32
  }
  func.func @transform_2(%arg0: i32) -> (i32, i32) {
    %c0_i32 = arith.constant 0 : i32
    %c0_i32_0 = arith.constant 0 : i32
    %c0_i32_1 = arith.constant 0 : i32
    return %c0_i32, %c0_i32_0 : i32, i32
  }
  func.func @transform_3(%arg0: i32) -> (i32, i32) {
    %c0_i32 = arith.constant 0 : i32
    %c0_i32_0 = arith.constant 0 : i32
    %c0_i32_1 = arith.constant 0 : i32
    return %c0_i32, %c0_i32_0 : i32, i32
  }
  func.func @transform_4(%arg0: i32) -> (i32, i32) {
    %c0_i32 = arith.constant 0 : i32
    %c0_i32_0 = arith.constant 0 : i32
    %c0_i32_1 = arith.constant 0 : i32
    return %c0_i32, %c0_i32_0 : i32, i32
  }
  func.func @transform_5(%arg0: i32) -> (i32, i32) {
    %c0_i32 = arith.constant 0 : i32
    %c0_i32_0 = arith.constant 0 : i32
    %c0_i32_1 = arith.constant 0 : i32
    return %c0_i32, %c0_i32_0 : i32, i32
  }
  func.func @transform_6(%arg0: i32) -> (i32, i32) {
    %c0_i32 = arith.constant 0 : i32
    %c0_i32_0 = arith.constant 0 : i32
    %c0_i32_1 = arith.constant 0 : i32
    return %c0_i32, %c0_i32_0 : i32, i32
  }
  func.func @transform_7(%arg0: i32) -> (i32, i32) {
    %c0_i32 = arith.constant 0 : i32
    %c0_i32_0 = arith.constant 0 : i32
    return %arg0, %c0_i32 : i32, i32
  }
}

</mosaic_0001>

<bundles_post_ra>
// kernel: tpu_custom_call.1
= control target key start
LH: loop header
LB: loop body
LE: loop exit
PB: predicated region body
PF: predicated region fallthrough
CT: control target
= control target key end

     0   :  { %12 = vsyncpa [#allocation3], 0  ;;  %s1990_s0 = inlined_call_operand.vmem [shape: f32[256,32], index: 0, kind: input, shape index: {}]   ;;  %s1991_s1 = inlined_call_operand.vmem [shape: bf16[32,128], index: 1, kind: input, shape index: {}]   ;;  %s1992_s2 = inlined_call_operand.vmem [shape: f32[1,128], index: 2, kind: input, shape index: {}]   ;;  %s1993_s3 = inlined_call_operand.vmem [shape: bf16[128,128], index: 3, kind: input, shape index: {}]   ;;  %s1994_s4 = inlined_call_operand.vmem [shape: f32[1,128], index: 4, kind: input, shape index: {}]   ;;  %s1995_s5 = inlined_call_operand.vmem [shape: bf16[128,128], index: 5, kind: input, shape index: {}]   ;;  %s1996_s6 = inlined_call_operand.vmem [shape: f32[1,128], index: 6, kind: input, shape index: {}]   ;;  %s1997_s7 = inlined_call_operand.hbm [shape: f32[256,128], index: 7, kind: output, shape index: {}]  }
   0x1   :  { %14 = vsyncpa [#allocation3 + $0x1], 0  ;;  %s1612_s24 = smov 0   ;;  %s1614_s25 = smov 0  }
   0x2   :  { %s1616_s26 = smov 0   ;;  %s1618_s27 = smov 0  }
   0x3 LB: > { %s1633_s28 = sadd.s32 4294967295, %s1567_s27   ;;  %s1118_s29 = sadd.s32 4294967294, %s1567_s27   ;;  %s1567_s27 = sphi %s1618_s27, %s2003_s27   ;;  %s1563_s26 = sphi %s1616_s26, %s2002_s26   ;;  %s1559_s25 = sphi %s1614_s25, %s2001_s25   ;;  %s1555_s24 = sphi %s1612_s24, %s2000_s24  }
   0x4   : > { %s1637_s30 = sadd.s32 1, %s1567_s27   ;;  %s179_s8 = sadd.s32 1, %s1563_s26 }
   0x5   : > { %s176_s9 = ssub.s32 %s1567_s27, %s1637_s30  ;;  %p189_p0 = scmp.ne.s32.totalorder %s1563_s26, %s1559_s25 }
   0x6   : > { %p177_p1 = scmp.eq.s32.totalorder %s176_s9, 0  ;;  %p190_p2 = scmp.eq.s32.totalorder %s1633_s28, 1 }
   0x7   : > { %p195_p3 = scmp.ne.s32.totalorder %s1559_s25, %s1555_s24  ;;  %p196_p4 = scmp.eq.s32.totalorder %s1118_s29, 1 }
   0x8   : > { %s1648_s10 = scalar_select %p177_p1, %s1563_s26, %s179_s8  }
   0x9   : > { %p1650_p5 = por %p190_p2, %p189_p0  ;;  %p1654_p6 = por %p196_p4, %p195_p3 }
   0xa   : > { %p1121_p7 = scmp.ge.s32.totalorder %s1567_s27, 1  ;;  %p241_p8 = scmp.lt.s32.totalorder %s1567_s27, 3 }
   0xc   : > { %p242_p9 = pnand %p1121_p7, %p241_p8 }
   0xd   : > { %v1359_v0 = vld [vmem:[%s1991_s1] sm:$0xff] (!%p242_p9)   ;;  %s1123_s15 = sshll.u32 (!%p242_p9), %s1633_s28, 4  ;;  %v1360_v1 = vld [vmem:[%s1991_s1 + $0x8] sm:$0xff] (!%p242_p9)   ;;  %vm328_vm0 = vcmask (!%p242_p9), 261120   ;;  %v1363_v28 = vld [vmem:[%s1993_s3 + $0x10] sm:$0xff] (!%p242_p9)   ;;  %s270_s16 = sand.u32 (!%p242_p9), 1, %s1559_s25  }
   0xe   : > { %245 = sbr.rel (%p242_p9) target bundleno = 781 (0x30d), region = 48  ;;  %p274_p10 = scmp.lt.s32.totalorder (!%p242_p9), %s1123_s15, 31  ;;  %1234 = vmatprep.subr.bf16.mxu0 (!%p242_p9), %v1359_v0  ;;  %v1361_v26 = vld [vmem:[%s1993_s3] sm:$0xff] (!%p242_p9)   ;;  %v1362_v27 = vld [vmem:[%s1993_s3 + $0x8] sm:$0xff] (!%p242_p9)   ;;  %v1364_v29 = vld [vmem:[%s1993_s3 + $0x18] sm:$0xff] (!%p242_p9)  }
   0xf   : > { %1235 = vmatpush3.bf16.msra.mxu0 (!%p242_p9), %v1359_v0  ;;  %1254 = vmatprep.subr.bf16.mxu1 (!%p242_p9), %v1361_v26  ;;  %v1365_v30 = vld [vmem:[%s1993_s3 + $0x20] sm:$0xff] (!%p242_p9)   ;;  %v1366_v31 = vld [vmem:[%s1993_s3 + $0x28] sm:$0xff] (!%p242_p9)   ;;  %v1367_v32 = vld [vmem:[%s1993_s3 + $0x30] sm:$0xff] (!%p242_p9)   ;;  %s1122_s17 = sshll.u32 (!%p242_p9), %s270_s16, 7  ;;  %s1569_s13 = smov (!%p242_p9), [#allocation2]  }
  0x10   : > { %1236 = vmatprep.subr.bf16.mxu0 (!%p242_p9), %v1360_v1  ;;  %1255 = vmatpush3.bf16.msra.mxu1 (!%p242_p9), %v1361_v26  ;;  %v1368_v33 = vld [vmem:[%s1993_s3 + $0x38] sm:$0xff] (!%p242_p9)   ;;  %v1723_v34 = vld [vmem:[%s1992_s2] ss:$0 sm:$0xff] (!%p242_p9)  ;;  %s1920_s20 = scalar_lea.vmem (!%p242_p9), [#allocation2], %s1122_s17  ;;  %s1509_s14 = sshll.u32 (!%p242_p9), %s1569_s13, 4  ;;  %s1510_s14 = int_to_ptr.vmem [resolvable:$false] %s1509_s14 }
  0x11   : > { %1256 = vmatprep.subr.bf16.mxu1 (!%p242_p9), %v1362_v27  ;;  %s1056_s22 = sshll.u32 (!%p242_p9), %s1920_s20, 4  ;;  %s1942_s22 = int_to_ptr.vmem [resolvable:$true] %s1056_s22 }
  0x12   : > { %s1505_s9 = scalar_lea.vmem (!%p242_p9), %s1942_s22, 2048  ;;  %p1512_p0 = scmp.lt.s32.totalorder (!%p242_p9), %s1942_s22, %s1510_s14 }
  0x13   : > { %1237 = vmatpush3.bf16.msra.mxu0 (!%p242_p9), %v1360_v1  ;;  %p1506_p11 = scmp.ne.s32.totalorder (!%p242_p9), %s1942_s22, %s1505_s9 }
  0x14   : > { %1257 = vmatpush3.bf16.msra.mxu1 (!%p242_p9), %v1362_v27 }
  0x15   : > { %s2005_s15 = smov (!%p274_p10, %s1123_s15), 31  ;;  %1258 = vmatprep.subr.bf16.mxu1 %v1363_v28  ;;  %p1507_p12 = pnand %p1506_p11, %p1650_p5 }
  0x16   : > { %s1124_s18 = sshll.u32 %s2005_s15, 3  ;;  %s1511_s15 = scalar_lea.vmem %s1510_s14, 4096 }
  0x17   : > { %s1670_s21 = scalar_lea.vmem %s1990_s0, %s1124_s18  ;;  %p1508_p13 = pneg %p1507_p12 }
  0x18   : > { %v281_v2 = vld [vmem:[%s1670_s21] sm:$0xff]  ;;  %v282_v3 = vld [vmem:[%s1670_s21 + $0x8] sm:$0xff]  ;;  %v283_v4 = vld [vmem:[%s1670_s21 + $0x10] sm:$0xff]  ;;  %1259 = vmatpush3.bf16.msra.mxu1 %v1363_v28  ;;  %p1513_p1 = scmp.lt.s32.totalorder %s1511_s15, %s1505_s9 }
  0x19   : > { %v297_v5 = vpack.c.bf16 %v282_v3, %v281_v2  ;;  %v284_v6 = vld [vmem:[%s1670_s21 + $0x18] sm:$0xff]  ;;  %v285_v7 = vld [vmem:[%s1670_s21 + $0x20] sm:$0xff]  ;;  %v286_v8 = vld [vmem:[%s1670_s21 + $0x28] sm:$0xff]  ;;  %1260 = vmatprep.subr.bf16.mxu1 %v1364_v29 }
  0x1a   : > { %v298_v9 = vpack.c.bf16 %v284_v6, %v283_v4  ;;  %v299_v10 = vpack.c.bf16 %v286_v8, %v285_v7  ;;  %v287_v11 = vld [vmem:[%s1670_s21 + $0x30] sm:$0xff]  ;;  %v288_v12 = vld [vmem:[%s1670_s21 + $0x38] sm:$0xff]  ;;  %v289_v13 = vld [vmem:[%s1670_s21 + $0x40] sm:$0xff]  ;;  %p1514_p2 = por %p1513_p1, %p1512_p0 }
  0x1b   : > { %1238 = vmatprep.mubr.msk.bf16.mxu0 %vm328_vm0, %v297_v5  ;;  %v290_v14 = vld [vmem:[%s1670_s21 + $0x48] sm:$0xff]  ;;  %v300_v15 = vpack.c.bf16 %v288_v12, %v287_v11  ;;  %v291_v17 = vld [vmem:[%s1670_s21 + $0x50] sm:$0xff]  ;;  %v292_v18 = vld [vmem:[%s1670_s21 + $0x58] sm:$0xff] }
  0x1c   : > { %1239 = vmatmul.mubr.msk.bf16.vlgmr.msra.gmra.mrb[0].mxu0 %vm328_vm0, %v298_v9  ;;  %v301_v16 = vpack.c.bf16 %v290_v14, %v289_v13  ;;  %v293_v19 = vld [vmem:[%s1670_s21 + $0x60] sm:$0xff]  ;;  %v294_v20 = vld [vmem:[%s1670_s21 + $0x68] sm:$0xff]  ;;  %v302_v21 = vpack.c.bf16 %v292_v18, %v291_v17  ;;  %v295_v23 = vld [vmem:[%s1670_s21 + $0x70] sm:$0xff]  ;;  %1261 = vmatpush3.bf16.msra.mxu1 %v1364_v29  ;;  %p1515_p3 = pnand %p1514_p2, %p1508_p13 }
  0x1d   : > { %1242 = vmatprep.mubr.msk.bf16.mxu0 %vm328_vm0, %v299_v10  ;;  %v303_v22 = vpack.c.bf16 %v294_v20, %v293_v19  ;;  %v296_v24 = vld [vmem:[%s1670_s21 + $0x78] sm:$0xff]  ;;  %1262 = vmatprep.subr.bf16.mxu1 %v1365_v30  ;;  %s1191_s21 = sshll.u32 %s1633_s28, 11  ;;  %s1949_s28 = scalar_lea.sflag [#allocation3], %s270_s16 }
  0x1e   : > { %v304_v25 = vpack.c.bf16 %v296_v24, %v295_v23  ;;  %s1940_s8 = scalar_lea.hbm %s1997_s7, %s1191_s21 }
  0x20   : > { %1263 = vmatpush3.bf16.msra.mxu1 %v1365_v30 }
  0x21   : > { %1264 = vmatprep.subr.bf16.mxu1 %v1366_v31 }
  0x24   : > { %1243 = vmatmul.mubr.msk.bf16.gmra.mrb[4].mxu0 %vm328_vm0, %v300_v15  ;;  %1265 = vmatpush3.bf16.msra.mxu1 %v1366_v31 }
  0x25   : > { %1246 = vmatprep.mubr.msk.bf16.mxu0 %vm328_vm0, %v301_v16  ;;  %1266 = vmatprep.subr.bf16.mxu1 %v1367_v32 }
  0x28   : > { %1267 = vmatpush3.bf16.msra.mxu1 %v1367_v32 }
  0x29   : > { %1268 = vmatprep.subr.bf16.mxu1 %v1368_v33 }
  0x2c   : > { %1247 = vmatmul.mubr.msk.bf16.gmra.mrb[8].mxu0 %vm328_vm0, %v302_v21  ;;  %1269 = vmatpush3.bf16.msra.mxu1 %v1368_v33 }
  0x2d   : > { %1250 = vmatprep.mubr.msk.bf16.mxu0 %vm328_vm0, %v303_v22 }
  0x34   : > { %1251 = vmatmul.mubr.msk.bf16.gmra.mrb[12].mxu0 %vm328_vm0, %v304_v25 }
  0xef   : > { %v1240_v35 = vpop.f32.mrb[0].mxu0 }
  0xf0   : > { %v1726_v36 = vadd.f32 %v1240_v35, %v1723_v34  ;;  %v387_v37 = vpop.f32.mrb[1].mxu0 }
  0xf1   : > { %v1729_v38 = vadd.f32 %v1723_v34, %v387_v37  ;;  %v1241_v39 = vpop.f32.mrb[2].mxu0 }
  0xf2   : > { %v1138_v40 = vmul.f32 -1.442695, %v1726_v36  ;;  %v1733_v41 = vadd.f32 %v1241_v39, %v1723_v34  ;;  %v390_v42 = vpop.f32.mrb[3].mxu0 }
  0xf3   : > { %v1136_v43 = vmul.f32 -1.442695, %v1729_v38  ;;  %v1737_v44 = vadd.f32 %v1723_v34, %v390_v42 }
  0xf4   : > { %1377 = vpow2.f32 %v1138_v40  ;;  %v1139_v45 = vmul.f32 -1.442695, %v1733_v41 }
  0xf5   : > { %1379 = vpow2.f32 %v1136_v43  ;;  %v1137_v46 = vmul.f32 -1.442695, %v1737_v44 }
  0xf6   : > { %1381 = vpow2.f32 %v1139_v45 }
  0xf7   : > { %1383 = vpow2.f32 %v1137_v46  ;;  %v1244_v47 = vpop.f32.mrb[4].mxu0 }
  0xf8   : > { %v1742_v48 = vadd.f32 %v1244_v47, %v1723_v34  ;;  %v403_v49 = vpop.f32.mrb[5].mxu0 }
  0xf9   : > { %v1745_v50 = vadd.f32 %v1723_v34, %v403_v49  ;;  %v1245_v51 = vpop.f32.mrb[6].mxu0 }
  0xfa   : > { %v1142_v52 = vmul.f32 -1.442695, %v1742_v48  ;;  %v1749_v53 = vadd.f32 %v1245_v51, %v1723_v34  ;;  %v406_v54 = vpop.f32.mrb[7].mxu0 }
  0xfb   : > { %v1140_v55 = vmul.f32 -1.442695, %v1745_v50  ;;  %v1753_v56 = vadd.f32 %v1723_v34, %v406_v54 }
  0xfc   : > { %1385 = vpow2.f32 %v1142_v52  ;;  %v1143_v57 = vmul.f32 -1.442695, %v1749_v53 }
  0xfd   : > { %1387 = vpow2.f32 %v1140_v55  ;;  %v1141_v58 = vmul.f32 -1.442695, %v1753_v56 }
  0xfe   : > { %v1378_v59 = vpop.eup %1377  ;;  %1389 = vpow2.f32 %v1143_v57 }
  0xff   : > { %v1380_v60 = vpop.eup %1379  ;;  %v500_v61 = vadd.f32 1.0, %v1378_v59  ;;  %1391 = vpow2.f32 %v1141_v58  ;;  %v1248_v62 = vpop.f32.mrb[8].mxu0 }
 0x100   : > { %v1382_v63 = vpop.eup %1381  ;;  %v498_v0 = vadd.f32 1.0, %v1380_v60  ;;  %v1758_v1 = vadd.f32 %v1248_v62, %v1723_v34  ;;  %v419_v2 = vpop.f32.mrb[9].mxu0 }
 0x101   : > { %v1384_v3 = vpop.eup %1383  ;;  %1393 = vrcp.f32 %v500_v61  ;;  %v501_v4 = vadd.f32 1.0, %v1382_v63  ;;  %v1761_v5 = vadd.f32 %v1723_v34, %v419_v2  ;;  %v1249_v6 = vpop.f32.mrb[10].mxu0 }
 0x102   : > { %1395 = vrcp.f32 %v498_v0  ;;  %v499_v7 = vadd.f32 1.0, %v1384_v3  ;;  %v1146_v8 = vmul.f32 -1.442695, %v1758_v1  ;;  %v1765_v9 = vadd.f32 %v1249_v6, %v1723_v34  ;;  %v422_v10 = vpop.f32.mrb[11].mxu0 }
 0x103   : > { %1397 = vrcp.f32 %v501_v4  ;;  %v1144_v11 = vmul.f32 -1.442695, %v1761_v5  ;;  %v1769_v12 = vadd.f32 %v1723_v34, %v422_v10 }
 0x104   : > { %1399 = vrcp.f32 %v499_v7  ;;  %v1147_v13 = vmul.f32 -1.442695, %v1765_v9 }
 0x105   : > { %1401 = vpow2.f32 %v1146_v8  ;;  %v1145_v14 = vmul.f32 -1.442695, %v1769_v12 }
 0x106   : > { %v1386_v15 = vpop.eup %1385  ;;  %1403 = vpow2.f32 %v1144_v11 }
 0x107   : > { %v1388_v16 = vpop.eup %1387  ;;  %v504_v17 = vadd.f32 1.0, %v1386_v15  ;;  %1405 = vpow2.f32 %v1147_v13  ;;  %v1252_v18 = vpop.f32.mrb[12].mxu0 }
 0x108   : > { %v1390_v19 = vpop.eup %1389  ;;  %v502_v20 = vadd.f32 1.0, %v1388_v16  ;;  %1407 = vpow2.f32 %v1145_v14  ;;  %v1774_v21 = vadd.f32 %v1252_v18, %v1723_v34  ;;  %v435_v22 = vpop.f32.mrb[13].mxu0 }
 0x109   : > { %v1392_v23 = vpop.eup %1391  ;;  %1409 = vrcp.f32 %v504_v17  ;;  %v505_v24 = vadd.f32 1.0, %v1390_v19  ;;  %v1777_v25 = vadd.f32 %v1723_v34, %v435_v22  ;;  %v1253_v26 = vpop.f32.mrb[14].mxu0 }
 0x10a   : > { %1411 = vrcp.f32 %v502_v20  ;;  %v503_v27 = vadd.f32 1.0, %v1392_v23  ;;  %v1150_v28 = vmul.f32 -1.442695, %v1774_v21  ;;  %v1781_v29 = vadd.f32 %v1253_v26, %v1723_v34  ;;  %v438_v30 = vpop.f32.mrb[15].mxu0 }
 0x10b   : > { %v1394_v31 = vpop.eup %1393  ;;  %1413 = vrcp.f32 %v505_v24  ;;  %v1148_v32 = vmul.f32 -1.442695, %v1777_v25  ;;  %v1785_v33 = vadd.f32 %v1723_v34, %v438_v30 }
 0x10c   : > { %v1396_v35 = vpop.eup %1395  ;;  %1415 = vrcp.f32 %v503_v27  ;;  %v1151_v37 = vmul.f32 -1.442695, %v1781_v29  ;;  %v548_v43 = vmul.f32 %v1394_v31, %v1726_v36  ;;  %v1373_v31 = vld [vmem:[%s1995_s5 + $0x20] sm:$0xff]  }
 0x10d   : > { %v1398_v39 = vpop.eup %1397  ;;  %1417 = vpow2.f32 %v1150_v28  ;;  %v1149_v40 = vmul.f32 -1.442695, %v1785_v33  ;;  %v546_v47 = vmul.f32 %v1396_v35, %v1729_v38  ;;  %v1376_v35 = vld [vmem:[%s1995_s5 + $0x38] sm:$0xff]  }
 0x10e   : > { %v1400_v42 = vpop.eup %1399  ;;  %v549_v45 = vmul.f32 %v1398_v39, %v1733_v41  ;;  %1419 = vpow2.f32 %v1148_v32  ;;  %v1374_v32 = vld [vmem:[%s1995_s5 + $0x28] sm:$0xff]  }
 0x10f   : > { %v1402_v46 = vpop.eup %1401  ;;  %1421 = vpow2.f32 %v1151_v37  ;;  %v547_v34 = vmul.f32 %v1400_v42, %v1737_v44  ;;  %v1832_v37 = vld [vmem:[%s1994_s4] ss:$0 sm:$0xff] }
 0x110   : > { %v1404_v49 = vpop.eup %1403  ;;  %v508_v51 = vadd.f32 1.0, %v1402_v46  ;;  %1423 = vpow2.f32 %v1149_v40  ;;  %v563_v52 = vpack.c.bf16 %v549_v45, %v548_v43 }
 0x111   : > { %v1406_v54 = vpop.eup %1405  ;;  %v506_v55 = vadd.f32 1.0, %v1404_v49  ;;  %v562_v57 = vpack.c.bf16 %v547_v34, %v546_v47 }
 0x112   : > { %v1408_v58 = vpop.eup %1407  ;;  %1425 = vrcp.f32 %v508_v51  ;;  %v509_v59 = vadd.f32 1.0, %v1406_v54 }
 0x113   : > { %v1410_v36 = vpop.eup %1409  ;;  %1427 = vrcp.f32 %v506_v55  ;;  %v507_v41 = vadd.f32 1.0, %v1408_v58  ;;  %1270 = vmatprep.mubr.bf16.mxu1 %v562_v57 }
 0x114   : > { %v1412_v60 = vpop.eup %1411  ;;  %1429 = vrcp.f32 %v509_v59  ;;  %1271 = vmatmul.mubr.bf16.vlgmr.msra.gmra.mrb[0].mxu1 %v563_v52  ;;  %v552_v61 = vmul.f32 %v1410_v36, %v1742_v48 }
 0x115   : > { %v1414_v38 = vpop.eup %1413  ;;  %1431 = vrcp.f32 %v507_v41  ;;  %v550_v0 = vmul.f32 %v1412_v60, %v1745_v50 }
 0x116   : > { %v1416_v44 = vpop.eup %1415  ;;  %v553_v62 = vmul.f32 %v1414_v38, %v1749_v53 }
 0x117   : > { %v1418_v63 = vpop.eup %1417  ;;  %v551_v2 = vmul.f32 %v1416_v44, %v1753_v56 }
 0x118   : > { %v1420_v3 = vpop.eup %1419  ;;  %v512_v4 = vadd.f32 1.0, %v1418_v63  ;;  %v565_v6 = vpack.c.bf16 %v553_v62, %v552_v61 }
 0x119   : > { %v1422_v7 = vpop.eup %1421  ;;  %v510_v8 = vadd.f32 1.0, %v1420_v3  ;;  %v564_v10 = vpack.c.bf16 %v551_v2, %v550_v0 }
 0x11a   : > { %v1424_v11 = vpop.eup %1423  ;;  %1433 = vrcp.f32 %v512_v4  ;;  %v513_v13 = vadd.f32 1.0, %v1422_v7 }
 0x11b   : > { %1435 = vrcp.f32 %v510_v8  ;;  %v511_v14 = vadd.f32 1.0, %v1424_v11  ;;  %1274 = vmatprep.mubr.bf16.mxu1 %v564_v10 }
 0x11c   : > { %v1426_v48 = vpop.eup %1425  ;;  %1437 = vrcp.f32 %v513_v13  ;;  %1275 = vmatmul.mubr.bf16.gmra.mrb[4].mxu1 %v565_v6 }
 0x11d   : > { %v1428_v53 = vpop.eup %1427  ;;  %1439 = vrcp.f32 %v511_v14  ;;  %v556_v56 = vmul.f32 %v1426_v48, %v1758_v1 }
 0x11e   : > { %v1430_v50 = vpop.eup %1429  ;;  %v554_v17 = vmul.f32 %v1428_v53, %v1761_v5 }
 0x11f   : > { %v1432_v15 = vpop.eup %1431  ;;  %v557_v16 = vmul.f32 %v1430_v50, %v1765_v9 }
 0x120   : > { %v555_v18 = vmul.f32 %v1432_v15, %v1769_v12  ;;  %v1369_v12 = vld [vmem:[%s1995_s5] sm:$0xff]  }
 0x121   : > { %v567_v19 = vpack.c.bf16 %v557_v16, %v556_v56  ;;  %1286 = vmatprep.subr.bf16.mxu0 %v1369_v12 }
 0x122   : > { %v566_v20 = vpack.c.bf16 %v555_v18, %v554_v17  ;;  %1287 = vmatpush3.bf16.msra.mxu0 %v1369_v12 }
 0x124   : > { %v1434_v22 = vpop.eup %1433  ;;  %1278 = vmatprep.mubr.bf16.mxu1 %v566_v20 }
 0x125   : > { %v1436_v23 = vpop.eup %1435  ;;  %1279 = vmatmul.mubr.bf16.gmra.mrb[8].mxu1 %v567_v19  ;;  %v560_v27 = vmul.f32 %v1434_v22, %v1774_v21  ;;  %v1370_v21 = vld [vmem:[%s1995_s5 + $0x8] sm:$0xff]  }
 0x126   : > { %v1438_v24 = vpop.eup %1437  ;;  %v558_v1 = vmul.f32 %v1436_v23, %v1777_v25  ;;  %1288 = vmatprep.subr.bf16.mxu0 %v1370_v21  ;;  %v1371_v25 = vld [vmem:[%s1995_s5 + $0x10] sm:$0xff]  }
 0x127   : > { %v1440_v26 = vpop.eup %1439  ;;  %v561_v28 = vmul.f32 %v1438_v24, %v1781_v29  ;;  %1289 = vmatpush3.bf16.msra.mxu0 %v1370_v21  ;;  %v1372_v29 = vld [vmem:[%s1995_s5 + $0x18] sm:$0xff]  }
 0x128   : > { %v559_v9 = vmul.f32 %v1440_v26, %v1785_v33  ;;  %1290 = vmatprep.subr.bf16.mxu0 %v1371_v25  ;;  %v1375_v33 = vld [vmem:[%s1995_s5 + $0x30] sm:$0xff]  }
 0x129   : > { %v569_v30 = vpack.c.bf16 %v561_v28, %v560_v27 }
 0x12a   : > { %v568_v5 = vpack.c.bf16 %v559_v9, %v558_v1 }
 0x12b   : > { %1291 = vmatpush3.bf16.msra.mxu0 %v1371_v25 }
 0x12c   : > { %1282 = vmatprep.mubr.bf16.mxu1 %v568_v5  ;;  %1292 = vmatprep.subr.bf16.mxu0 %v1372_v29 }
 0x12d   : > { %1283 = vmatmul.mubr.bf16.gmra.mrb[12].mxu1 %v569_v30 }
 0x12f   : > { %1293 = vmatpush3.bf16.msra.mxu0 %v1372_v29 }
 0x130   : > { %1294 = vmatprep.subr.bf16.mxu0 %v1373_v31 }
 0x133   : > { %1295 = vmatpush3.bf16.msra.mxu0 %v1373_v31 }
 0x134   : > { %1296 = vmatprep.subr.bf16.mxu0 %v1374_v32 }
 0x137   : > { %1297 = vmatpush3.bf16.msra.mxu0 %v1374_v32 }
 0x138   : > { %1298 = vmatprep.subr.bf16.mxu0 %v1375_v33 }
 0x13b   : > { %1299 = vmatpush3.bf16.msra.mxu0 %v1375_v33 }
 0x13c   : > { %1300 = vmatprep.subr.bf16.mxu0 %v1376_v35 }
 0x13f   : > { %1301 = vmatpush3.bf16.msra.mxu0 %v1376_v35 }
 0x1e7   : > { %v1272_v39 = vpop.f32.mrb[0].mxu1 }
 0x1e8   : > { %v1835_v40 = vadd.f32 %v1272_v39, %v1832_v37  ;;  %v675_v42 = vpop.f32.mrb[1].mxu1 }
 0x1e9   : > { %v1838_v43 = vadd.f32 %v1832_v37, %v675_v42  ;;  %v1273_v45 = vpop.f32.mrb[2].mxu1 }
 0x1ea   : > { %v1163_v46 = vmul.f32 -1.442695, %v1835_v40  ;;  %v1842_v47 = vadd.f32 %v1273_v45, %v1832_v37  ;;  %v678_v34 = vpop.f32.mrb[3].mxu1 }
 0x1eb   : > { %v1161_v49 = vmul.f32 -1.442695, %v1838_v43  ;;  %v1846_v51 = vadd.f32 %v1832_v37, %v678_v34 }
 0x1ec   : > { %1441 = vpow2.f32 %v1163_v46  ;;  %v1164_v52 = vmul.f32 -1.442695, %v1842_v47 }
 0x1ed   : > { %1443 = vpow2.f32 %v1161_v49  ;;  %v1162_v54 = vmul.f32 -1.442695, %v1846_v51 }
 0x1ee   : > { %1445 = vpow2.f32 %v1164_v52 }
 0x1ef   : > { %1447 = vpow2.f32 %v1162_v54  ;;  %v1276_v55 = vpop.f32.mrb[4].mxu1 }
 0x1f0   : > { %v1851_v57 = vadd.f32 %v1276_v55, %v1832_v37  ;;  %v691_v58 = vpop.f32.mrb[5].mxu1 }
 0x1f1   : > { %v1854_v59 = vadd.f32 %v1832_v37, %v691_v58  ;;  %v1277_v36 = vpop.f32.mrb[6].mxu1 }
 0x1f2   : > { %v1167_v41 = vmul.f32 -1.442695, %v1851_v57  ;;  %v1858_v60 = vadd.f32 %v1277_v36, %v1832_v37  ;;  %v694_v38 = vpop.f32.mrb[7].mxu1 }
 0x1f3   : > { %v1165_v44 = vmul.f32 -1.442695, %v1854_v59  ;;  %v1862_v61 = vadd.f32 %v1832_v37, %v694_v38 }
 0x1f4   : > { %1449 = vpow2.f32 %v1167_v41  ;;  %v1168_v62 = vmul.f32 -1.442695, %v1858_v60 }
 0x1f5   : > { %1451 = vpow2.f32 %v1165_v44  ;;  %v1166_v63 = vmul.f32 -1.442695, %v1862_v61 }
 0x1f6   : > { %v1442_v0 = vpop.eup %1441  ;;  %1453 = vpow2.f32 %v1168_v62 }
 0x1f7   : > { %v1444_v2 = vpop.eup %1443  ;;  %v788_v3 = vadd.f32 1.0, %v1442_v0  ;;  %1455 = vpow2.f32 %v1166_v63 }
 0x1f8   : > { %v1446_v4 = vpop.eup %1445  ;;  %v786_v6 = vadd.f32 1.0, %v1444_v2  ;;  %v1280_v7 = vpop.f32.mrb[8].mxu1 }
 0x1f9   : > { %v1448_v8 = vpop.eup %1447  ;;  %1457 = vrcp.f32 %v788_v3  ;;  %v789_v10 = vadd.f32 1.0, %v1446_v4  ;;  %v1867_v11 = vadd.f32 %v1280_v7, %v1832_v37  ;;  %v707_v13 = vpop.f32.mrb[9].mxu1 }
 0x1fa   : > { %1459 = vrcp.f32 %v786_v6  ;;  %v787_v14 = vadd.f32 1.0, %v1448_v8  ;;  %v1870_v48 = vadd.f32 %v1832_v37, %v707_v13  ;;  %v1281_v53 = vpop.f32.mrb[10].mxu1 }
 0x1fb   : > { %1461 = vrcp.f32 %v789_v10  ;;  %v1171_v50 = vmul.f32 -1.442695, %v1867_v11  ;;  %v1874_v15 = vadd.f32 %v1281_v53, %v1832_v37  ;;  %v710_v56 = vpop.f32.mrb[11].mxu1 }
 0x1fc   : > { %1463 = vrcp.f32 %v787_v14  ;;  %v1169_v16 = vmul.f32 -1.442695, %v1870_v48  ;;  %v1878_v17 = vadd.f32 %v1832_v37, %v710_v56 }
 0x1fd   : > { %1465 = vpow2.f32 %v1171_v50  ;;  %v1172_v18 = vmul.f32 -1.442695, %v1874_v15 }
 0x1fe   : > { %v1450_v19 = vpop.eup %1449  ;;  %1467 = vpow2.f32 %v1169_v16  ;;  %v1170_v20 = vmul.f32 -1.442695, %v1878_v17 }
 0x1ff   : > { %v1452_v22 = vpop.eup %1451  ;;  %v792_v23 = vadd.f32 1.0, %v1450_v19  ;;  %1469 = vpow2.f32 %v1172_v18 }
 0x200   : > { %v1454_v24 = vpop.eup %1453  ;;  %v790_v26 = vadd.f32 1.0, %v1452_v22  ;;  %1471 = vpow2.f32 %v1170_v20  ;;  %v1284_v27 = vpop.f32.mrb[12].mxu1 }
 0x201   : > { %v1456_v28 = vpop.eup %1455  ;;  %1473 = vrcp.f32 %v792_v23  ;;  %v793_v1 = vadd.f32 1.0, %v1454_v24  ;;  %v1883_v9 = vadd.f32 %v1284_v27, %v1832_v37  ;;  %v723_v30 = vpop.f32.mrb[13].mxu1 }
 0x202   : > { %1475 = vrcp.f32 %v790_v26  ;;  %v791_v5 = vadd.f32 1.0, %v1456_v28  ;;  %v1886_v12 = vadd.f32 %v1832_v37, %v723_v30  ;;  %v1285_v21 = vpop.f32.mrb[14].mxu1 }
 0x203   : > { %v1458_v25 = vpop.eup %1457  ;;  %1477 = vrcp.f32 %v793_v1  ;;  %v1175_v29 = vmul.f32 -1.442695, %v1883_v9  ;;  %v1890_v31 = vadd.f32 %v1285_v21, %v1832_v37  ;;  %v726_v32 = vpop.f32.mrb[15].mxu1 }
 0x204   : > { %v1460_v33 = vpop.eup %1459  ;;  %1479 = vrcp.f32 %v791_v5  ;;  %v1173_v35 = vmul.f32 -1.442695, %v1886_v12  ;;  %v1894_v39 = vadd.f32 %v1832_v37, %v726_v32  ;;  %v836_v34 = vmul.f32 %v1458_v25, %v1835_v40 }
 0x205   : > { %v1462_v42 = vpop.eup %1461  ;;  %1481 = vpow2.f32 %v1175_v29  ;;  %v1176_v45 = vmul.f32 -1.442695, %v1890_v31  ;;  %v834_v55 = vmul.f32 %v1460_v33, %v1838_v43  ;;  %v1177_v29 = vld [vmem:[%s1996_s6] ss:$0 sm:$0xff] }
 0x206   : > { %v1464_v46 = vpop.eup %1463  ;;  %v837_v49 = vmul.f32 %v1462_v42, %v1842_v47  ;;  %1483 = vpow2.f32 %v1173_v35  ;;  %v1174_v52 = vmul.f32 -1.442695, %v1894_v39 }
 0x207   : > { %v1466_v54 = vpop.eup %1465  ;;  %v835_v58 = vmul.f32 %v1464_v46, %v1846_v51  ;;  %1485 = vpow2.f32 %v1176_v45 }
 0x208   : > { %v1468_v37 = vpop.eup %1467  ;;  %v851_v36 = vpack.c.bf16 %v837_v49, %v836_v34  ;;  %v796_v41 = vadd.f32 1.0, %v1466_v54  ;;  %1487 = vpow2.f32 %v1174_v52 }
 0x209   : > { %v1470_v38 = vpop.eup %1469  ;;  %v794_v44 = vadd.f32 1.0, %v1468_v37  ;;  %v850_v62 = vpack.c.bf16 %v835_v58, %v834_v55 }
 0x20a   : > { %v1472_v63 = vpop.eup %1471  ;;  %1489 = vrcp.f32 %v796_v41  ;;  %v797_v40 = vadd.f32 1.0, %v1470_v38 }
 0x20b   : > { %v1474_v47 = vpop.eup %1473  ;;  %1491 = vrcp.f32 %v794_v44  ;;  %v795_v0 = vadd.f32 1.0, %v1472_v63  ;;  %1302 = vmatprep.mubr.bf16.mxu0 %v850_v62 }
 0x20c   : > { %v1476_v2 = vpop.eup %1475  ;;  %1493 = vrcp.f32 %v797_v40  ;;  %1303 = vmatmul.mubr.bf16.vlgmr.msra.gmra.mrb[16].mxu0 %v851_v36  ;;  %v840_v3 = vmul.f32 %v1474_v47, %v1851_v57 }
 0x20d   : > { %v1478_v43 = vpop.eup %1477  ;;  %1495 = vrcp.f32 %v795_v0  ;;  %v838_v7 = vmul.f32 %v1476_v2, %v1854_v59 }
 0x20e   : > { %v1480_v51 = vpop.eup %1479  ;;  %v841_v4 = vmul.f32 %v1478_v43, %v1858_v60 }
 0x20f   : > { %v1482_v6 = vpop.eup %1481  ;;  %v839_v8 = vmul.f32 %v1480_v51, %v1862_v61 }
 0x210   : > { %v1484_v10 = vpop.eup %1483  ;;  %v800_v13 = vadd.f32 1.0, %v1482_v6  ;;  %v853_v14 = vpack.c.bf16 %v841_v4, %v840_v3 }
 0x211   : > { %v1486_v53 = vpop.eup %1485  ;;  %v798_v50 = vadd.f32 1.0, %v1484_v10  ;;  %v852_v56 = vpack.c.bf16 %v839_v8, %v838_v7 }
 0x212   : > { %v1488_v16 = vpop.eup %1487  ;;  %1497 = vrcp.f32 %v800_v13  ;;  %v801_v18 = vadd.f32 1.0, %v1486_v53 }
 0x213   : > { %1499 = vrcp.f32 %v798_v50  ;;  %v799_v19 = vadd.f32 1.0, %v1488_v16  ;;  %1306 = vmatprep.mubr.bf16.mxu0 %v852_v56 }
 0x214   : > { %v1490_v57 = vpop.eup %1489  ;;  %1501 = vrcp.f32 %v801_v18  ;;  %1307 = vmatmul.mubr.bf16.gmra.mrb[20].mxu0 %v853_v14 }
 0x215   : > { %v1492_v60 = vpop.eup %1491  ;;  %1503 = vrcp.f32 %v799_v19  ;;  %v844_v61 = vmul.f32 %v1490_v57, %v1867_v11 }
 0x216   : > { %v1494_v59 = vpop.eup %1493  ;;  %v842_v23 = vmul.f32 %v1492_v60, %v1870_v48 }
 0x217   : > { %v1496_v20 = vpop.eup %1495  ;;  %v845_v22 = vmul.f32 %v1494_v59, %v1874_v15 }
 0x218   : > { %v843_v24 = vmul.f32 %v1496_v20, %v1878_v17 }
 0x219   : > { %v855_v26 = vpack.c.bf16 %v845_v22, %v844_v61 }
 0x21a   : > { %v854_v27 = vpack.c.bf16 %v843_v24, %v842_v23 }
 0x21c   : > { %v1498_v28 = vpop.eup %1497  ;;  %1310 = vmatprep.mubr.bf16.mxu0 %v854_v27 }
 0x21d   : > { %v1500_v1 = vpop.eup %1499  ;;  %1311 = vmatmul.mubr.bf16.gmra.mrb[24].mxu0 %v855_v26  ;;  %v848_v21 = vmul.f32 %v1498_v28, %v1883_v9 }
 0x21e   : > { %v1502_v30 = vpop.eup %1501  ;;  %v846_v15 = vmul.f32 %v1500_v1, %v1886_v12 }
 0x21f   : > { %v1504_v5 = vpop.eup %1503  ;;  %v849_v11 = vmul.f32 %v1502_v30, %v1890_v31 }
 0x220   : > { %v847_v48 = vmul.f32 %v1504_v5, %v1894_v39 }
 0x221   : > { %v857_v25 = vpack.c.bf16 %v849_v11, %v848_v21 }
 0x222   : > { %v856_v17 = vpack.c.bf16 %v847_v48, %v846_v15 }
 0x224   : > { %1314 = vmatprep.mubr.bf16.mxu0 %v856_v17 }
 0x225   : > { %1315 = vmatmul.mubr.bf16.gmra.mrb[28].mxu0 %v857_v25 }
 0x2df   : > { %v1304_v32 = vpop.f32.mrb[16].mxu0 }
 0x2e0   : > { %v972_v33 = vadd.f32 %v1304_v32, %v1177_v29  ;;  %v963_v9 = vpop.f32.mrb[17].mxu0 }
 0x2e1   : > { %v964_v35 = vadd.f32 %v1177_v29, %v963_v9  ;;  %v1305_v31 = vpop.f32.mrb[18].mxu0 }
 0x2e2   : > { %1028 = vst [vmem:[%s1920_s20 + $0x10] sm:$0xff] %v972_v33  ;;  %v975_v12 = vadd.f32 %v1305_v31, %v1177_v29  ;;  %v966_v39 = vpop.f32.mrb[19].mxu0 }
 0x2e3   : > { %1026 = vst [vmem:[%s1920_s20] sm:$0xff] %v964_v35  ;;  %v967_v42 = vadd.f32 %v1177_v29, %v966_v39 }
 0x2e4   : > { %1029 = vst [vmem:[%s1920_s20 + $0x18] sm:$0xff] %v975_v12 }
 0x2e5   : > { %1027 = vst [vmem:[%s1920_s20 + $0x8] sm:$0xff] %v967_v42 }
 0x2e7   : > { %v1308_v45 = vpop.f32.mrb[20].mxu0 }
 0x2e8   : > { %v988_v46 = vadd.f32 %v1308_v45, %v1177_v29  ;;  %v979_v34 = vpop.f32.mrb[21].mxu0 }
 0x2e9   : > { %v980_v49 = vadd.f32 %v1177_v29, %v979_v34  ;;  %v1309_v52 = vpop.f32.mrb[22].mxu0 }
 0x2ea   : > { %1032 = vst [vmem:[%s1920_s20 + $0x30] sm:$0xff] %v988_v46  ;;  %v991_v54 = vadd.f32 %v1309_v52, %v1177_v29  ;;  %v982_v55 = vpop.f32.mrb[23].mxu0 }
 0x2eb   : > { %1030 = vst [vmem:[%s1920_s20 + $0x20] sm:$0xff] %v980_v49  ;;  %v983_v58 = vadd.f32 %v1177_v29, %v982_v55 }
 0x2ec   : > { %1033 = vst [vmem:[%s1920_s20 + $0x38] sm:$0xff] %v991_v54 }
 0x2ed   : > { %1031 = vst [vmem:[%s1920_s20 + $0x28] sm:$0xff] %v983_v58 }
 0x2f0   : > { %v1312_v37 = vpop.f32.mrb[24].mxu0 }
 0x2f1   : > { %v1004_v36 = vadd.f32 %v1312_v37, %v1177_v29  ;;  %v995_v41 = vpop.f32.mrb[25].mxu0 }
 0x2f2   : > { %v996_v38 = vadd.f32 %v1177_v29, %v995_v41  ;;  %v1313_v44 = vpop.f32.mrb[26].mxu0 }
 0x2f3   : > { %1036 = vst [vmem:[%s1920_s20 + $0x50] sm:$0xff] %v1004_v36  ;;  %v1007_v62 = vadd.f32 %v1313_v44, %v1177_v29  ;;  %v998_v63 = vpop.f32.mrb[27].mxu0 }
 0x2f4   : > { %1034 = vst [vmem:[%s1920_s20 + $0x40] sm:$0xff] %v996_v38  ;;  %v999_v40 = vadd.f32 %v1177_v29, %v998_v63 }
 0x2f5   : > { %1037 = vst [vmem:[%s1920_s20 + $0x58] sm:$0xff] %v1007_v62 }
 0x2f6   : > { %1035 = vst [vmem:[%s1920_s20 + $0x48] sm:$0xff] %v999_v40 }
 0x2f8   : > { %v1316_v47 = vpop.f32.mrb[28].mxu0 }
 0x2f9   : > { %v1020_v0 = vadd.f32 %v1316_v47, %v1177_v29  ;;  %v1011_v2 = vpop.f32.mrb[29].mxu0 }
 0x2fa   : > { %v1012_v43 = vadd.f32 %v1177_v29, %v1011_v2  ;;  %v1317_v51 = vpop.f32.mrb[30].mxu0 }
 0x2fb   : > { %1040 = vst [vmem:[%s1920_s20 + $0x70] sm:$0xff] %v1020_v0  ;;  %v1023_v3 = vadd.f32 %v1317_v51, %v1177_v29  ;;  %v1014_v4 = vpop.f32.mrb[31].mxu0 }
 0x2fc   : > { %1038 = vst [vmem:[%s1920_s20 + $0x60] sm:$0xff] %v1012_v43  ;;  %v1015_v6 = vadd.f32 %v1177_v29, %v1014_v4 }
 0x2fd   : > { %1041 = vst [vmem:[%s1920_s20 + $0x78] sm:$0xff] %v1023_v3 }
 0x2fe   : > { %1039 = vst [vmem:[%s1920_s20 + $0x68] sm:$0xff] %v1015_v6 }
 0x2ff   : > { %1518 = shalt.err (!%p1515_p3)
}
 0x300   : > { %s1519_s16 = scalar_lea.hbm %s1940_s8, 2048  ;;  %s1523_s19 = scalar_lea.hbm %s1997_s7, 4096 }
 0x301   : > { %p1520_p4 = scmp.ne.s32.totalorder %s1940_s8, %s1519_s16  ;;  %p1524_p9 = scmp.lt.u32.totalorder %s1940_s8, %s1997_s7 }
 0x302   : > { %p1525_p10 = scmp.lt.u32.totalorder %s1523_s19, %s1519_s16  ;;  %p1527_p12 = scmp.lt.u32.totalorder %s1519_s16, %s1940_s8 }
 0x303   : > { %p1521_p7 = pnand %p1520_p4, %p1650_p5 }
 0x304   : > { %p1526_p11 = por %p1525_p10, %p1524_p9 }
 0x305   : > { %p1522_p8 = pneg %p1521_p7 }
 0x306   : > { %p1528_p13 = por %p1527_p12, %p1526_p11 }
 0x308   : > { %p1529_p0 = pnand %p1528_p13, %p1522_p8 }
 0x30a   : > { %1532 = shalt.err (!%p1529_p0)
}
 0x30b   : > { %s1570_s23 = smov 128   ;;  %s1571_s29 = smov 8  }
 0x30c   : > { %1318 = dma.vmem_to_hbm [thread:$0]  (%p1650_p5), %s1942_s22, 2048, %s1940_s8, %s1949_s28, %s1570_s23, %s1570_s23, %s1571_s29  }
 0x30d PF: > { %p1324_p1 = scmp.ge.s32.totalorder %s1567_s27, 2  ;;  %s1071_s9 = sand.u32 1, %s1555_s24  }
 0x30e   : > { %s1072_s13 = scalar_lea.sflag [#allocation3], %s1071_s9 }
 0x30f   : > { %p1321_p2 = pnand %p1324_p1, %p1654_p6 }
 0x311   : > { %1550 = dma.done.wait (!%p1321_p2), %s1072_s13, 2048  }
 0x312   : > { %1552 = vsyncadd (!%p1321_p2), %s1072_s13, 4294965248  ;;  %p17_p3 = scmp.ge.s32.totalorder %s1637_s30, 4   ;;  %s2000_s24 = smov %s1559_s25 }
 0x313   : > { %s2001_s25 = smov %s1563_s26  ;;  %s2002_s26 = smov %s1648_s10 }
 0x314   : > { %s2003_s27 = smov %s1637_s30  ;;  %19 = sbr.rel (!%p17_p3) target bundleno = 3 (0x3), region = 83 }
 0x31b   :  { %1077 = vsyncpa [#allocation3], 1 }
 0x31c   :  { %1079 = vsyncpa [#allocation3 + $0x1], 1 }

</bundles_post_ra>
